<compile_context>
chip_gen: v7x
topology: tpu7x:2x2x1
jax: 0.10.0
libtpu: 0.0.40
codegen_flags: <defaults>
</compile_context>

<pallas_src>
import functools

import jax
import jax.numpy as jnp
from jax.experimental import pallas as pl
from jax.experimental.pallas import tpu as pltpu


def _round_up(a, m):
    return ((a + m - 1) // m) * m


# ----------------------------- Pallas kernel -------------------------------

def classnet_kernel(x_ref, w1_ref, b1_ref, w2_ref, b2_ref, w3_ref, b3_ref,
                    o_ref):
    """Fused ClassNet_channel forward for one batch tile.

    x_ref : (TB, D)       flattened input tile (f32)
    w1_ref: (D, D)        fc1 weight, (in, out) layout, bf16
    b1_ref: (1, D)        f32
    w2_ref: (D, Dh)       fc2 weight, bf16
    b2_ref: (1, Dh)       f32
    w3_ref: (Dh, Cpad)    fc3 weight, zero-padded on the out/lane axis, bf16
    b3_ref: (1, Cpad)     f32
    o_ref : (TB, Cpad)    output tile, bf16, lane-dense padded num_classes
    """
    cd = w1_ref.dtype                      # MXU operand dtype (bf16)
    x = x_ref[...]
    xf = x.astype(jnp.float32)

    # attn = relu(fc1(x)); x = x * attn     (channel attention)
    attn = jnp.dot(x.astype(cd), w1_ref[...],
                   preferred_element_type=jnp.float32)
    attn = jnp.maximum(attn + b1_ref[...], 0.0)
    xa = xf * attn                          # f32 elementwise (v5e-safe)

    # h = relu(fc2(x))
    h = jnp.dot(xa.astype(cd), w2_ref[...],
                preferred_element_type=jnp.float32)
    h = jnp.maximum(h + b2_ref[...], 0.0)

    # TODO(synk): Dropout(p=0.2) is stochastic only in training mode; identity
    #             (eval semantics) here.

    # out = fc3(h)   (output lanes padded to a full 128-lane slab)
    out = jnp.dot(h.astype(cd), w3_ref[...],
                  preferred_element_type=jnp.float32) + b3_ref[...]
    o_ref[...] = out.astype(o_ref.dtype)


# --------------------------- one-time param prep -----------------------------

def prepare_params(params, *, compute_dtype=jnp.bfloat16):
    """One-time transform of PyTorch-style (out,in) Linear params to kernel layout.

    Hoisted out of the per-call forward (these are separate XLA ops and would
    otherwise dominate wall clock at small batch):
      * transpose (out,in) -> (in,out) so the kernel does a plain x @ W
      * zero-pad fc3's output dim to a full 128-lane slab (unmasked stores)
      * cast weights to bf16 (MXU-native operands, f32 accumulate in-kernel)
      * keep biases in f32, shaped (1, N) for lane broadcast
    """
    W1, b1, W2, b2, W3, b3 = params
    D = W1.shape[1]
    Dh = W2.shape[0]
    C = W3.shape[0]
    LANE = 128
    C_pad = max(LANE, _round_up(C, LANE))

    w1 = jnp.transpose(W1).astype(compute_dtype)                     # (D, D)
    w2 = jnp.transpose(W2).astype(compute_dtype)                     # (D, Dh)
    w3 = jnp.zeros((Dh, C_pad), compute_dtype).at[:, :C].set(
        jnp.transpose(W3).astype(compute_dtype))                     # (Dh, Cpad)
    b1r = b1.reshape(1, D).astype(jnp.float32)
    b2r = b2.reshape(1, Dh).astype(jnp.float32)
    b3r = jnp.zeros((1, C_pad), jnp.float32).at[0, :C].set(
        b3.astype(jnp.float32))
    return (w1, b1r, w2, b2r, w3, b3r)


# ------------------------------- tiling pick ---------------------------------

def _pick_batch_tile(B, max_block_b=512):
    """Batch tile: multiple of 8; multiple of 256 whenever the grid has >1 step
    (so both v7x TensorCores get work and bf16 output tiling stays aligned)."""
    SUB = 8
    b8 = _round_up(B, SUB)
    if b8 <= max_block_b:
        tb = b8                                   # single full-array block
        if b8 >= 512:                             # big enough: split for megacore
            tb = _round_up((b8 + 1) // 2, 256)
    else:
        tb = max_block_b                          # 512 (multiple of 256)
    return tb


# ------------------------------ JAX wrapper ---------------------------------

def classnet_channel_forward(x, kernel_params, *, num_classes=5,
                             max_block_b=512):
    """kernel_params: output of prepare_params() (pre-transposed / padded / bf16)."""
    w1, b1, w2, b2, w3, b3 = kernel_params

    B = x.shape[0]
    x2 = x.reshape(B, -1)                      # flatten(start_dim=1)
    D = x2.shape[1]
    Dh = w2.shape[1]
    C_pad = w3.shape[1]

    tb = _pick_batch_tile(B, max_block_b)
    B_pad = _round_up(B, tb)
    # Skip the padded activation copy entirely when not needed.
    x2p = x2 if B_pad == B else jnp.pad(x2, ((0, B_pad - B), (0, 0)))

    grid = (B_pad // tb,)

    flops = 2 * B_pad * (D * D + D * Dh + Dh * C_pad) + 4 * B_pad * D
    bytes_accessed = int(
        x2p.size * x2p.dtype.itemsize
        + w1.size * w1.dtype.itemsize
        + w2.size * w2.dtype.itemsize
        + w3.size * w3.dtype.itemsize
        + (b1.size + b2.size + b3.size) * 4
        + B_pad * C_pad * 2)                   # bf16 output writeback

    out_pad = pl.pallas_call(
        classnet_kernel,
        out_shape=jax.ShapeDtypeStruct((B_pad, C_pad), jnp.bfloat16),
        grid=grid,
        in_specs=[
            pl.BlockSpec((tb, D), lambda i: (i, 0)),
            pl.BlockSpec((D, D), lambda i: (0, 0)),
            pl.BlockSpec((1, D), lambda i: (0, 0)),
            pl.BlockSpec((D, Dh), lambda i: (0, 0)),
            pl.BlockSpec((1, Dh), lambda i: (0, 0)),
            pl.BlockSpec((Dh, C_pad), lambda i: (0, 0)),
            pl.BlockSpec((1, C_pad), lambda i: (0, 0)),
        ],
        out_specs=pl.BlockSpec((tb, C_pad), lambda i: (i, 0)),
        compiler_params=pltpu.CompilerParams(
            dimension_semantics=("parallel",)),
        cost_estimate=pl.CostEstimate(
            flops=flops, transcendentals=0, bytes_accessed=bytes_accessed),
    )(x2p, w1, b1, w2, b2, w3, b3)

    # Slice off batch/lane padding; return in the input dtype.
    return out_pad[:B, :num_classes].astype(x.dtype)


# ---------------------------- pure-JAX reference ----------------------------

def ref_classnet(x, params):
    W1, b1, W2, b2, W3, b3 = params
    x2 = x.reshape(x.shape[0], -1)
    attn = jnp.maximum(x2 @ W1.T + b1, 0.0)
    x2 = x2 * attn
    h = jnp.maximum(x2 @ W2.T + b2, 0.0)
    # dropout == identity (eval semantics)
    return h @ W3.T + b3


# --------------------------------- main --------------------------------------

if __name__ == "__main__":
    # ClassNet_channel(in_channels=128, base_channels=128, num_classes=5)
    B = 2
    in_channels, base_channels, num_classes = 128, 128, 5

    key = jax.random.PRNGKey(0)
    key, k1, k2, k3, k4, k5, k6, kx = jax.random.split(key, 8)

    # PyTorch-style Linear weights: (out_features, in_features)
    W1 = 0.05 * jax.random.normal(k1, (in_channels, in_channels), jnp.float32)
    b1 = 0.05 * jax.random.normal(k2, (in_channels,), jnp.float32)
    W2 = 0.05 * jax.random.normal(k3, (base_channels, in_channels), jnp.float32)
    b2 = 0.05 * jax.random.normal(k4, (base_channels,), jnp.float32)
    W3 = 0.05 * jax.random.normal(k5, (num_classes, base_channels), jnp.float32)
    b3 = 0.05 * jax.random.normal(k6, (num_classes,), jnp.float32)
    params = (W1, b1, W2, b2, W3, b3)

    # One-time param preparation (transpose / pad / bf16 cast) — NOT per call.
    kernel_params = prepare_params(params)

    # Input: (2, 8, 4, 4) flattens to 128 features = in_channels.
    x = jax.random.normal(kx, (B, 8, 4, 4), jnp.float32)

    fwd = jax.jit(functools.partial(classnet_channel_forward,
                                    num_classes=num_classes))
    out = jax.block_until_ready(fwd(x, kernel_params))
    ref = jax.block_until_ready(ref_classnet(x, params))

    assert out.shape == (B, num_classes), out.shape
    # bf16 matmul operands / bf16 output with f32 accumulation -> looser tol.
    assert jnp.allclose(out, ref, rtol=3e-2, atol=3e-2), (
        float(jnp.max(jnp.abs(out - ref))))

    print("KERNEL_OK")
</pallas_src>

<mosaic_0001>
module attributes {stable_mosaic.version = 11 : i64} {
  func.func @classnet_kernel(%arg0: i32, %arg1: memref<8x128xf32, #tpu.memory_space<vmem>>, %arg2: memref<128x128xbf16, #tpu.memory_space<vmem>>, %arg3: memref<1x128xf32, #tpu.memory_space<vmem>>, %arg4: memref<128x128xbf16, #tpu.memory_space<vmem>>, %arg5: memref<1x128xf32, #tpu.memory_space<vmem>>, %arg6: memref<128x128xbf16, #tpu.memory_space<vmem>>, %arg7: memref<1x128xf32, #tpu.memory_space<vmem>>, %arg8: memref<8x128xbf16, #tpu.memory_space<vmem>>) attributes {dimension_semantics = [#tpu.dimension_semantics<parallel>], iteration_bounds = array<i64: 1>, scalar_prefetch = 0 : i64, scratch_operands = 0 : i64, tpu.core_type = #tpu.core_type<tc>, window_params = [{transform_indices = @transform_0, window_bounds = array<i64: 8, 128>}, {pipeline_mode = #tpu.pipeline_mode<synchronous>, transform_indices = @transform_1, window_bounds = array<i64: 128, 128>}, {pipeline_mode = #tpu.pipeline_mode<synchronous>, transform_indices = @transform_2, window_bounds = array<i64: 1, 128>}, {pipeline_mode = #tpu.pipeline_mode<synchronous>, transform_indices = @transform_3, window_bounds = array<i64: 128, 128>}, {pipeline_mode = #tpu.pipeline_mode<synchronous>, transform_indices = @transform_4, window_bounds = array<i64: 1, 128>}, {pipeline_mode = #tpu.pipeline_mode<synchronous>, transform_indices = @transform_5, window_bounds = array<i64: 128, 128>}, {pipeline_mode = #tpu.pipeline_mode<synchronous>, transform_indices = @transform_6, window_bounds = array<i64: 1, 128>}, {transform_indices = @transform_7, window_bounds = array<i64: 8, 128>}]} {
    %c0 = arith.constant 0 : index
    %c0_0 = arith.constant 0 : index
    %0 = vector.load %arg1[%c0, %c0_0] : memref<8x128xf32, #tpu.memory_space<vmem>>, vector<8x128xf32>
    %1 = arith.truncf %0 : vector<8x128xf32> to vector<8x128xbf16>
    %c0_1 = arith.constant 0 : index
    %c0_2 = arith.constant 0 : index
    %2 = vector.load %arg2[%c0_1, %c0_2] : memref<128x128xbf16, #tpu.memory_space<vmem>>, vector<128x128xbf16>
    %cst = arith.constant dense<0.000000e+00> : vector<8x128xf32>
    %3 = tpu.matmul %1, %2, %cst {dimension_numbers = #tpu.dot_dimension_numbers<[1], [0], [0], [1], [0, 0, 1, 1], [], []>} : vector<8x128xbf16>, vector<128x128xbf16>, vector<8x128xf32> -> vector<8x128xf32>
    %c0_3 = arith.constant 0 : index
    %c0_4 = arith.constant 0 : index
    %4 = vector.load %arg3[%c0_3, %c0_4] : memref<1x128xf32, #tpu.memory_space<vmem>>, vector<1x128xf32>
    %5 = vector.broadcast %4 : vector<1x128xf32> to vector<8x128xf32>
    %6 = arith.addf %3, %5 : vector<8x128xf32>
    %cst_5 = arith.constant 0.000000e+00 : f32
    %7 = vector.broadcast %cst_5 : f32 to vector<8x128xf32>
    %8 = arith.maximumf %6, %7 : vector<8x128xf32>
    %9 = arith.mulf %0, %8 : vector<8x128xf32>
    %10 = arith.truncf %9 : vector<8x128xf32> to vector<8x128xbf16>
    %c0_6 = arith.constant 0 : index
    %c0_7 = arith.constant 0 : index
    %11 = vector.load %arg4[%c0_6, %c0_7] : memref<128x128xbf16, #tpu.memory_space<vmem>>, vector<128x128xbf16>
    %cst_8 = arith.constant dense<0.000000e+00> : vector<8x128xf32>
    %12 = tpu.matmul %10, %11, %cst_8 {dimension_numbers = #tpu.dot_dimension_numbers<[1], [0], [0], [1], [0, 0, 1, 1], [], []>} : vector<8x128xbf16>, vector<128x128xbf16>, vector<8x128xf32> -> vector<8x128xf32>
    %c0_9 = arith.constant 0 : index
    %c0_10 = arith.constant 0 : index
    %13 = vector.load %arg5[%c0_9, %c0_10] : memref<1x128xf32, #tpu.memory_space<vmem>>, vector<1x128xf32>
    %14 = vector.broadcast %13 : vector<1x128xf32> to vector<8x128xf32>
    %15 = arith.addf %12, %14 : vector<8x128xf32>
    %cst_11 = arith.constant 0.000000e+00 : f32
    %16 = vector.broadcast %cst_11 : f32 to vector<8x128xf32>
    %17 = arith.maximumf %15, %16 : vector<8x128xf32>
    %18 = arith.truncf %17 : vector<8x128xf32> to vector<8x128xbf16>
    %c0_12 = arith.constant 0 : index
    %c0_13 = arith.constant 0 : index
    %19 = vector.load %arg6[%c0_12, %c0_13] : memref<128x128xbf16, #tpu.memory_space<vmem>>, vector<128x128xbf16>
    %cst_14 = arith.constant dense<0.000000e+00> : vector<8x128xf32>
    %20 = tpu.matmul %18, %19, %cst_14 {dimension_numbers = #tpu.dot_dimension_numbers<[1], [0], [0], [1], [0, 0, 1, 1], [], []>} : vector<8x128xbf16>, vector<128x128xbf16>, vector<8x128xf32> -> vector<8x128xf32>
    %c0_15 = arith.constant 0 : index
    %c0_16 = arith.constant 0 : index
    %21 = vector.load %arg7[%c0_15, %c0_16] : memref<1x128xf32, #tpu.memory_space<vmem>>, vector<1x128xf32>
    %22 = vector.broadcast %21 : vector<1x128xf32> to vector<8x128xf32>
    %23 = arith.addf %20, %22 : vector<8x128xf32>
    %24 = arith.truncf %23 : vector<8x128xf32> to vector<8x128xbf16>
    %c0_17 = arith.constant 0 : index
    %c0_18 = arith.constant 0 : index
    %25 = vector.load %arg8[%c0_17, %c0_18] : memref<8x128xbf16, #tpu.memory_space<vmem>>, vector<8x128xbf16>
    tpu.vector_store %arg8[%c0_17, %c0_18], %24 {strides = array<i32>} : memref<8x128xbf16, #tpu.memory_space<vmem>>, vector<8x128xbf16>,
    return
  }
  func.func @transform_0(%arg0: i32) -> (i32, i32) {
    %c0_i32 = arith.constant 0 : i32
    %c0_i32_0 = arith.constant 0 : i32
    return %arg0, %c0_i32 : i32, i32
  }
  func.func @transform_1(%arg0: i32) -> (i32, i32) {
    %c0_i32 = arith.constant 0 : i32
    %c0_i32_0 = arith.constant 0 : i32
    %c0_i32_1 = arith.constant 0 : i32
    return %c0_i32, %c0_i32_0 : i32, i32
  }
  func.func @transform_2(%arg0: i32) -> (i32, i32) {
    %c0_i32 = arith.constant 0 : i32
    %c0_i32_0 = arith.constant 0 : i32
    %c0_i32_1 = arith.constant 0 : i32
    return %c0_i32, %c0_i32_0 : i32, i32
  }
  func.func @transform_3(%arg0: i32) -> (i32, i32) {
    %c0_i32 = arith.constant 0 : i32
    %c0_i32_0 = arith.constant 0 : i32
    %c0_i32_1 = arith.constant 0 : i32
    return %c0_i32, %c0_i32_0 : i32, i32
  }
  func.func @transform_4(%arg0: i32) -> (i32, i32) {
    %c0_i32 = arith.constant 0 : i32
    %c0_i32_0 = arith.constant 0 : i32
    %c0_i32_1 = arith.constant 0 : i32
    return %c0_i32, %c0_i32_0 : i32, i32
  }
  func.func @transform_5(%arg0: i32) -> (i32, i32) {
    %c0_i32 = arith.constant 0 : i32
    %c0_i32_0 = arith.constant 0 : i32
    %c0_i32_1 = arith.constant 0 : i32
    return %c0_i32, %c0_i32_0 : i32, i32
  }
  func.func @transform_6(%arg0: i32) -> (i32, i32) {
    %c0_i32 = arith.constant 0 : i32
    %c0_i32_0 = arith.constant 0 : i32
    %c0_i32_1 = arith.constant 0 : i32
    return %c0_i32, %c0_i32_0 : i32, i32
  }
  func.func @transform_7(%arg0: i32) -> (i32, i32) {
    %c0_i32 = arith.constant 0 : i32
    %c0_i32_0 = arith.constant 0 : i32
    return %arg0, %c0_i32 : i32, i32
  }
}

</mosaic_0001>

<bundles_post_ra>
// kernel: classnet_channel_forward.1
= control target key start
LH: loop header
LB: loop body
LE: loop exit
PB: predicated region body
PF: predicated region fallthrough
CT: control target
= control target key end

     0   :  { %12 = vsyncpa [#allocation3], 0  ;;  %s555_s24 = smov [#allocation2]   ;;  %s705_s0 = inlined_call_operand.vmem [shape: f32[8,128], index: 0, kind: input, shape index: {}]   ;;  %s706_s1 = inlined_call_operand.vmem [shape: bf16[128,128], index: 1, kind: input, shape index: {}]   ;;  %s707_s2 = inlined_call_operand.vmem [shape: f32[1,128], index: 2, kind: input, shape index: {}]   ;;  %s708_s3 = inlined_call_operand.vmem [shape: bf16[128,128], index: 3, kind: input, shape index: {}]   ;;  %s709_s4 = inlined_call_operand.vmem [shape: f32[1,128], index: 4, kind: input, shape index: {}]   ;;  %s710_s5 = inlined_call_operand.hbm [shape: bf16[128,128], index: 5, kind: input, shape index: {}]   ;;  %s711_s6 = inlined_call_operand.vmem [shape: f32[1,128], index: 6, kind: input, shape index: {}]   ;;  %s712_s7 = inlined_call_operand.vmem [shape: bf16[8,128], index: 7, kind: output, shape index: {}]  }
   0x1   :  { %s28_s25 = sshll.u32 %s555_s24, 4  ;;  %s531_s28 = scalar_lea.hbm %s710_s5, 1024  ;;  %s29_s25 = int_to_ptr.vmem [resolvable:$true] %s28_s25 }
   0x2   :  { %p532_p0 = scmp.ne.s32.totalorder %s710_s5, %s531_s28  ;;  %p535_p1 = scmp.lt.u32.totalorder %s531_s28, %s710_s5 }
   0x4   :  { %p537_p2 = pnand %p535_p1, %p532_p0 }
   0x6   :  { %540 = shalt.err (!%p537_p2)
}
   0x7   :  { %s541_s10 = scalar_lea.vmem %s29_s25, 1024  ;;  %p546_p4 = scmp.lt.s32.totalorder %s29_s25, %s29_s25 }
   0x8   :  { %p542_p3 = scmp.ne.s32.totalorder %s29_s25, %s541_s10  ;;  %p547_p5 = scmp.lt.s32.totalorder %s541_s10, %s541_s10 }
   0xa   :  { %p548_p6 = por %p547_p5, %p546_p4 }
   0xc   :  { %p549_p7 = pnand %p548_p6, %p542_p3 }
   0xe   :  { %552 = shalt.err (!%p549_p7)
}
   0xf   :  { %s556_s11 = smov 64   ;;  %s557_s12 = smov 4  }
  0x10   :  { %34 = dma.hbm_to_vmem [thread:$0]  %s710_s5, 1024, %s29_s25, [#allocation3], %s556_s11, %s556_s11, %s557_s12  }
  0x11   :  { %553 = dma.done.wait [#allocation3], 1024  }
  0x12   :  { %554 = vsyncadd [#allocation3], 4294966272  ;;  %v558_v0 = vmov 0.0   ;;  %vm559_vm0 = vmmov 0   ;;  %v507_v1 = vld [vmem:[%s706_s1] sm:$0xff]   ;;  %v508_v2 = vld [vmem:[%s706_s1 + $0x8] sm:$0xff]  }
  0x13   :  { %442 = vmatprep.subr.bf16.mxu0 %v558_v0  ;;  %458 = vmatprep.mubr.msk.bf16.mxu0 %vm559_vm0, %v558_v0  ;;  %v509_v3 = vld [vmem:[%s706_s1 + $0x10] sm:$0xff]   ;;  %v515_v4 = vld [vmem:[%s708_s3] sm:$0xff]   ;;  %v510_v5 = vld [vmem:[%s706_s1 + $0x18] sm:$0xff]  }
  0x14   :  { %462 = vmatprep.subr.bf16.mxu1 %v558_v0  ;;  %478 = vmatprep.mubr.msk.bf16.mxu1 %vm559_vm0, %v558_v0  ;;  %v516_v6 = vld [vmem:[%s708_s3 + $0x8] sm:$0xff]   ;;  %v511_v7 = vld [vmem:[%s706_s1 + $0x20] sm:$0xff]   ;;  %v517_v8 = vld [vmem:[%s708_s3 + $0x10] sm:$0xff]  }
  0x15   :  { %443 = vmatpush3.bf16.msra.mxu0 %v507_v1  ;;  %463 = vmatpush3.bf16.msra.mxu1 %v515_v4  ;;  %v512_v9 = vld [vmem:[%s706_s1 + $0x28] sm:$0xff]   ;;  %v518_v10 = vld [vmem:[%s708_s3 + $0x18] sm:$0xff]   ;;  %v513_v11 = vld [vmem:[%s706_s1 + $0x30] sm:$0xff]  }
  0x16   :  { %444 = vmatprep.subr.bf16.mxu0 %v558_v0  ;;  %464 = vmatprep.subr.bf16.mxu1 %v558_v0  ;;  %v519_v12 = vld [vmem:[%s708_s3 + $0x20] sm:$0xff]   ;;  %v514_v13 = vld [vmem:[%s706_s1 + $0x38] sm:$0xff]   ;;  %v520_v15 = vld [vmem:[%s708_s3 + $0x28] sm:$0xff]  }
  0x17   :  { %v41_v14 = vld [vmem:[%s705_s0] sm:$0xff]  ;;  %v521_v17 = vld [vmem:[%s708_s3 + $0x30] sm:$0xff]   ;;  %v522_v18 = vld [vmem:[%s708_s3 + $0x38] sm:$0xff]  }
  0x18   :  { %v42_v16 = vpack.c.bf16 %v41_v14, %v41_v14  ;;  %v523_v19 = vld [vmem:[#allocation2] sm:$0xff]   ;;  %v524_v20 = vld [vmem:[#allocation2 + $0x8] sm:$0xff]   ;;  %v525_v21 = vld [vmem:[#allocation2 + $0x10] sm:$0xff]  }
  0x19   :  { %445 = vmatpush3.bf16.msra.mxu0 %v508_v2  ;;  %465 = vmatpush3.bf16.msra.mxu1 %v516_v6  ;;  %v526_v22 = vld [vmem:[#allocation2 + $0x18] sm:$0xff]   ;;  %v527_v23 = vld [vmem:[#allocation2 + $0x20] sm:$0xff]   ;;  %v528_v24 = vld [vmem:[#allocation2 + $0x28] sm:$0xff]  }
  0x1a   :  { %446 = vmatprep.subr.bf16.mxu0 %v558_v0  ;;  %466 = vmatprep.subr.bf16.mxu1 %v558_v0  ;;  %v388_v25 = vld [vmem:[%s707_s2] ss:$0 sm:$0xff]  ;;  %v529_v34 = vld [vmem:[#allocation2 + $0x30] sm:$0xff]   ;;  %v530_v35 = vld [vmem:[#allocation2 + $0x38] sm:$0xff]  }
  0x1b   :  { %v397_v36 = vld [vmem:[%s709_s4] ss:$0 sm:$0xff] }
  0x1c   :  { %v406_v44 = vld [vmem:[%s711_s6] ss:$0 sm:$0xff] }
  0x1d   :  { %447 = vmatpush3.bf16.msra.mxu0 %v509_v3  ;;  %467 = vmatpush3.bf16.msra.mxu1 %v517_v8 }
  0x1e   :  { %448 = vmatprep.subr.bf16.mxu0 %v558_v0  ;;  %468 = vmatprep.subr.bf16.mxu1 %v558_v0 }
  0x21   :  { %449 = vmatpush3.bf16.msra.mxu0 %v510_v5  ;;  %469 = vmatpush3.bf16.msra.mxu1 %v518_v10 }
  0x22   :  { %450 = vmatprep.subr.bf16.mxu0 %v558_v0  ;;  %470 = vmatprep.subr.bf16.mxu1 %v558_v0 }
  0x25   :  { %451 = vmatpush3.bf16.msra.mxu0 %v511_v7  ;;  %471 = vmatpush3.bf16.msra.mxu1 %v519_v12 }
  0x26   :  { %452 = vmatprep.subr.bf16.mxu0 %v558_v0  ;;  %472 = vmatprep.subr.bf16.mxu1 %v558_v0 }
  0x29   :  { %453 = vmatpush3.bf16.msra.mxu0 %v512_v9  ;;  %473 = vmatpush3.bf16.msra.mxu1 %v520_v15 }
  0x2a   :  { %454 = vmatprep.subr.bf16.mxu0 %v558_v0  ;;  %474 = vmatprep.subr.bf16.mxu1 %v558_v0 }
  0x2d   :  { %455 = vmatpush3.bf16.msra.mxu0 %v513_v11  ;;  %475 = vmatpush3.bf16.msra.mxu1 %v521_v17 }
  0x2e   :  { %456 = vmatprep.subr.bf16.mxu0 %v558_v0  ;;  %476 = vmatprep.subr.bf16.mxu1 %v558_v0 }
  0x31   :  { %457 = vmatpush3.bf16.msra.mxu0 %v514_v13  ;;  %477 = vmatpush3.bf16.msra.mxu1 %v522_v18 }
  0x32   :  { %482 = vmatprep.subr.bf16.mxu0 %v558_v0 }
  0x34   :  { %459 = vmatmul.mubr.bf16.vlgmr.msra.gmra.mrb[0].mxu0 %v42_v16 }
  0x35   :  { %498 = vmatprep.mubr.msk.bf16.mxu0 %vm559_vm0, %v558_v0  ;;  %483 = vmatpush3.bf16.msra.mxu0 %v523_v19 }
  0x36   :  { %484 = vmatprep.subr.bf16.mxu0 %v558_v0 }
  0x39   :  { %485 = vmatpush3.bf16.msra.mxu0 %v524_v20 }
  0x3a   :  { %486 = vmatprep.subr.bf16.mxu0 %v558_v0 }
  0x3d   :  { %487 = vmatpush3.bf16.msra.mxu0 %v525_v21 }
  0x3e   :  { %488 = vmatprep.subr.bf16.mxu0 %v558_v0 }
  0x41   :  { %489 = vmatpush3.bf16.msra.mxu0 %v526_v22 }
  0x42   :  { %490 = vmatprep.subr.bf16.mxu0 %v558_v0 }
  0x45   :  { %491 = vmatpush3.bf16.msra.mxu0 %v527_v23 }
  0x46   :  { %492 = vmatprep.subr.bf16.mxu0 %v558_v0 }
  0x49   :  { %493 = vmatpush3.bf16.msra.mxu0 %v528_v24 }
  0x4a   :  { %494 = vmatprep.subr.bf16.mxu0 %v558_v0 }
  0x4d   :  { %495 = vmatpush3.bf16.msra.mxu0 %v529_v34 }
  0x4e   :  { %496 = vmatprep.subr.bf16.mxu0 %v558_v0 }
  0x51   :  { %497 = vmatpush3.bf16.msra.mxu0 %v530_v35 }
 0x107   :  { %v148_v26 = vpop.f32.mrb[0].mxu0 }
 0x108   :  { %v149_v27 = vadd.f32 %v388_v25, %v148_v26  ;;  %v460_v28 = vpop.f32.mrb[1].mxu0 }
 0x109   :  { %v151_v29 = vpop.f32.mrb[2].mxu0 }
 0x10a   :  { %v154_v30 = vmax.f32 %v149_v27, 0.0  ;;  %v461_v31 = vpop.f32.mrb[3].mxu0 }
 0x10c   :  { %v155_v32 = vmul.f32 %v154_v30, %v41_v14 }
 0x10e   :  { %v156_v33 = vpack.c.bf16 %v155_v32, %v155_v32 }
 0x110   :  { %479 = vmatmul.mubr.bf16.vlgmr.msra.gmra.mrb[0].mxu1 %v156_v33 }
 0x1e3   :  { %v262_v37 = vpop.f32.mrb[0].mxu1 }
 0x1e4   :  { %v263_v38 = vadd.f32 %v397_v36, %v262_v37  ;;  %v480_v39 = vpop.f32.mrb[1].mxu1 }
 0x1e5   :  { %v265_v40 = vpop.f32.mrb[2].mxu1 }
 0x1e6   :  { %v268_v41 = vmax.f32 %v263_v38, 0.0  ;;  %v481_v42 = vpop.f32.mrb[3].mxu1 }
 0x1e8   :  { %v269_v43 = vpack.c.bf16 %v268_v41, %v268_v41 }
 0x1ea   :  { %499 = vmatmul.mubr.bf16.vlgmr.msra.gmra.mrb[4].mxu0 %v269_v43 }
 0x2bd   :  { %v375_v45 = vpop.f32.mrb[4].mxu0 }
 0x2be   :  { %v376_v46 = vadd.f32 %v406_v44, %v375_v45  ;;  %v500_v47 = vpop.f32.mrb[5].mxu0 }
 0x2bf   :  { %v378_v48 = vpop.f32.mrb[6].mxu0 }
 0x2c0   :  { %v381_v49 = vpack.c.bf16 %v376_v46, %v376_v46  ;;  %v501_v50 = vpop.f32.mrb[7].mxu0 }
 0x2c2   :  { %382 = vst [vmem:[%s712_s7] sm:$0xf] %v381_v49 }
 0x2c3   :  { %387 = vsyncpa [#allocation3], 1 }

</bundles_post_ra>
